<compile_context>
chip_gen: v7x
topology: tpu7x:2x2x1
jax: 0.10.0
libtpu: 0.0.40
codegen_flags: <defaults>
</compile_context>

<pallas_src>
import functools

import jax
import jax.numpy as jnp
from jax import lax
from jax.experimental import pallas as pl
from jax.experimental.pallas import tpu as pltpu

_CHUNK = 8  # timesteps per unrolled recurrence step (one sublane tile)


def _rglru_block_kernel(x_ref, wxy_ref, wgate_ref, wo_ref, a_sp_ref,
                        out_ref, h_carry, a_scr, b_scr, h_scr, *, n_chunks):
    hidden = a_sp_ref.shape[1]
    seq_idx = pl.program_id(1)

    @pl.when(seq_idx == 0)
    def _():
        h_carry[...] = jnp.zeros_like(h_carry)

    x = x_ref[0]                                          # (TS, D)
    x_bf = x.astype(jnp.bfloat16)

    # Fused  x @ [wx | wy]  -> xw (recurrence path), gy (SiLU gating path).
    xwy = jnp.dot(x_bf, wxy_ref[...], preferred_element_type=jnp.float32)  # (TS, 2H)
    xw = xwy[:, :hidden]
    gy = xwy[:, hidden:]

    # Fused  xw @ [w_input_gate | w_a_gate].
    gates = jax.nn.sigmoid(
        jnp.dot(xw.astype(jnp.bfloat16), wgate_ref[...],
                preferred_element_type=jnp.float32))                       # (TS, 2H)
    gate_x = gates[:, :hidden]
    gate_a = gates[:, hidden:]

    log_a = (-8.0) * gate_a * a_sp_ref[...]               # c = 8.0, (1,H) broadcast
    a = jnp.exp(log_a)
    mult = jnp.sqrt(1.0 - a * a)                          # == sqrt(1 - exp(2*log_a))
    b = mult * gate_x * xw

    # Stage a/b in VMEM so the loop does clean aligned (8, H) loads.
    a_scr[...] = a
    b_scr[...] = b

    # Linear recurrence h_t = a_t * h_{t-1} + b_t, chunked by _CHUNK steps.
    def chunk_body(c, h_prev):
        base = pl.multiple_of(c * _CHUNK, _CHUNK)
        a_c = a_scr[pl.ds(base, _CHUNK), :]               # (8, H)
        b_c = b_scr[pl.ds(base, _CHUNK), :]               # (8, H)
        h = h_prev                                        # (1, H)
        rows = []
        for t in range(_CHUNK):                           # fully unrolled
            h = a_c[t:t + 1, :] * h + b_c[t:t + 1, :]
            rows.append(h)
        h_scr[pl.ds(base, _CHUNK), :] = jnp.concatenate(rows, axis=0)
        return h

    h_last = lax.fori_loop(0, n_chunks, chunk_body, h_carry[...],
                           unroll=(n_chunks <= 16))
    h_carry[...] = h_last                                 # carry to next seq tile

    h = h_scr[...]                                        # (TS, H)
    gy_silu = gy * jax.nn.sigmoid(gy)                     # SiLU
    y = x + jnp.dot((h * gy_silu).astype(jnp.bfloat16), wo_ref[...],
                    preferred_element_type=jnp.float32)
    out_ref[0] = y.astype(out_ref.dtype)


def _pick_seq_tile(seqlen, max_tile=128):
    assert seqlen % _CHUNK == 0, f"seqlen must be a multiple of {_CHUNK}"
    ts = _CHUNK
    for cand in range(_CHUNK, min(seqlen, max_tile) + 1, _CHUNK):
        if seqlen % cand == 0:
            ts = cand
    return ts


def rglru_block(x, wx_t, wy_t, wig_t, wag_t, wo_t, a_sp,
                tok_idx=None, cu_seqlens=None, seq_tile=None):
    """RGLRUBlock forward (conv_size=None path).

    x: (bsz, seqlen, dim). w*_t: nn.Linear weights pre-transposed to (in, out).
    a_sp: (1, hidden) = softplus(a) tiled to full hidden width.
    """
    del tok_idx, cu_seqlens  # TODO(synk): no segment resets / conv branch
    bsz, seqlen, dim = x.shape
    hidden = wx_t.shape[1]

    ts = seq_tile or _pick_seq_tile(seqlen)
    assert seqlen % ts == 0 and ts % _CHUNK == 0
    n_chunks = ts // _CHUNK

    bf = jnp.bfloat16
    wxy = jnp.concatenate([wx_t, wy_t], axis=1).astype(bf)       # (D, 2H)
    wgate = jnp.concatenate([wig_t, wag_t], axis=1).astype(bf)   # (H, 2H)
    wo_bf = wo_t.astype(bf)                                      # (H, D)
    a_sp = a_sp.astype(jnp.float32)

    grid_spec = pltpu.PrefetchScalarGridSpec(
        num_scalar_prefetch=0,
        grid=(bsz, seqlen // ts),
        in_specs=[
            pl.BlockSpec((1, ts, dim), lambda b, s: (b, s, 0)),
            pl.BlockSpec((dim, 2 * hidden), lambda b, s: (0, 0)),
            pl.BlockSpec((hidden, 2 * hidden), lambda b, s: (0, 0)),
            pl.BlockSpec((hidden, dim), lambda b, s: (0, 0)),
            pl.BlockSpec((1, hidden), lambda b, s: (0, 0)),
        ],
        out_specs=pl.BlockSpec((1, ts, dim), lambda b, s: (b, s, 0)),
        scratch_shapes=[
            pltpu.VMEM((1, hidden), jnp.float32),    # carried h_{t-1}
            pltpu.VMEM((ts, hidden), jnp.float32),   # a
            pltpu.VMEM((ts, hidden), jnp.float32),   # b
            pltpu.VMEM((ts, hidden), jnp.float32),   # h
        ],
    )

    return pl.pallas_call(
        functools.partial(_rglru_block_kernel, n_chunks=n_chunks),
        out_shape=jax.ShapeDtypeStruct((bsz, seqlen, dim), x.dtype),
        grid_spec=grid_spec,
        compiler_params=pltpu.CompilerParams(
            dimension_semantics=("parallel", "arbitrary"),
            vmem_limit_bytes=48 * 1024 * 1024,
        ),
    )(x, wxy, wgate, wo_bf, a_sp)


def rglru_block_reference(x, wx_t, wy_t, wig_t, wag_t, wo_t, a_sp):
    """Pure-JAX reference mirroring the PyTorch forward (conv_size=None),
    with the same bf16-operand / f32-accumulate matmuls the kernel uses."""
    bf, f32 = jnp.bfloat16, jnp.float32
    xw = jnp.dot(x.astype(bf), wx_t.astype(bf), preferred_element_type=f32)
    gy = jnp.dot(x.astype(bf), wy_t.astype(bf), preferred_element_type=f32)
    gate_x = jax.nn.sigmoid(
        jnp.dot(xw.astype(bf), wig_t.astype(bf), preferred_element_type=f32))
    gate_a = jax.nn.sigmoid(
        jnp.dot(xw.astype(bf), wag_t.astype(bf), preferred_element_type=f32))
    log_a = -8.0 * gate_a * a_sp
    a = jnp.exp(log_a)
    mult = jnp.sqrt(1.0 - a * a)
    b = mult * gate_x * xw

    def step(h, ab):
        a_t, b_t = ab
        h = a_t * h + b_t
        return h, h

    h0 = jnp.zeros((x.shape[0], xw.shape[-1]), f32)
    _, hs = lax.scan(step, h0, (jnp.swapaxes(a, 0, 1), jnp.swapaxes(b, 0, 1)))
    h = jnp.swapaxes(hs, 0, 1)                           # (B, S, H)
    gy_silu = gy * jax.nn.sigmoid(gy)
    return x + jnp.dot((h * gy_silu).astype(bf), wo_t.astype(bf),
                       preferred_element_type=f32)


def _trunc_normal(key, shape, std):
    return std * jax.random.truncated_normal(key, -3.0, 3.0, shape, jnp.float32)


if __name__ == "__main__":
    # RGLRUBlock(dim=16, hidden_dim=32, n_heads=4, multiple_of=8,
    #            lru_dim_multiplier=None, conv_size=None)
    bsz, seqlen = 2, 8
    dim, hidden_dim, n_heads = 16, 32, 4
    head_dim = hidden_dim // n_heads

    key = jax.random.PRNGKey(0)
    kx, kwy, kwx, kwo, kig, kag, ka = jax.random.split(key, 7)

    in_std = dim ** (-0.5)
    out_std = hidden_dim ** (-0.5)
    gate_std = hidden_dim ** (-0.5)

    # nn.Linear weights are (out, in); store transposed (in, out) for the kernel.
    wy_t = _trunc_normal(kwy, (hidden_dim, dim), in_std).T     # (dim, hidden)
    wx_t = _trunc_normal(kwx, (hidden_dim, dim), in_std).T     # (dim, hidden)
    wo_t = _trunc_normal(kwo, (dim, hidden_dim), out_std).T    # (hidden, dim)
    wig_t = _trunc_normal(kig, (hidden_dim, hidden_dim), gate_std).T
    wag_t = _trunc_normal(kag, (hidden_dim, hidden_dim), gate_std).T

    # RGLRU `a` parameter: uniform in [0.9^2+1e-8, 0.999^2+1e-8], log, * 0.5.
    a_param = jax.random.uniform(
        ka, (head_dim,), jnp.float32,
        minval=0.9 ** 2 + 1e-8, maxval=0.999 ** 2 + 1e-8)
    a_param = 0.5 * jnp.log(a_param)
    # Pre-tile per-head `a` to full hidden width and apply softplus once.
    a_sp = jax.nn.softplus(jnp.tile(a_param, n_heads))[None, :]  # (1, hidden)

    x = jax.random.normal(kx, (bsz, seqlen, dim), jnp.float32)
    tok_idx = jnp.broadcast_to(jnp.arange(seqlen), (bsz, seqlen))
    cu_seqlens = jnp.array([0, seqlen], jnp.int32)

    out = rglru_block(x, wx_t, wy_t, wig_t, wag_t, wo_t, a_sp,
                      tok_idx=tok_idx, cu_seqlens=cu_seqlens)
    out = jax.block_until_ready(out)

    ref = rglru_block_reference(x, wx_t, wy_t, wig_t, wag_t, wo_t, a_sp)
    ref = jax.block_until_ready(ref)

    assert out.shape == (bsz, seqlen, dim)
    max_err = float(jnp.max(jnp.abs(out - ref)))
    assert jnp.allclose(out, ref, atol=2e-3, rtol=2e-3), \
        f"max abs err = {max_err}"
    print("KERNEL_OK")
</pallas_src>

<mosaic_0001>
module attributes {stable_mosaic.version = 11 : i64} {
  func.func @_rglru_block_kernel(%arg0: i32, %arg1: i32, %arg2: memref<1x8x16xf32, #tpu.memory_space<vmem>>, %arg3: memref<16x64xbf16, #tpu.memory_space<vmem>>, %arg4: memref<32x64xbf16, #tpu.memory_space<vmem>>, %arg5: memref<32x16xbf16, #tpu.memory_space<vmem>>, %arg6: memref<1x32xf32, #tpu.memory_space<vmem>>, %arg7: memref<1x8x16xf32, #tpu.memory_space<vmem>>, %arg8: memref<1x32xf32, #tpu.memory_space<vmem>>, %arg9: memref<8x32xf32, #tpu.memory_space<vmem>>, %arg10: memref<8x32xf32, #tpu.memory_space<vmem>>, %arg11: memref<8x32xf32, #tpu.memory_space<vmem>>) attributes {dimension_semantics = [#tpu.dimension_semantics<parallel>, #tpu.dimension_semantics<arbitrary>], iteration_bounds = array<i64: 2, 1>, scalar_prefetch = 0 : i64, scratch_operands = 4 : i64, tpu.core_type = #tpu.core_type<tc>, window_params = [{transform_indices = @transform_0, window_bounds = array<i64: 1, 8, 16>}, {pipeline_mode = #tpu.pipeline_mode<synchronous>, transform_indices = @transform_1, window_bounds = array<i64: 16, 64>}, {pipeline_mode = #tpu.pipeline_mode<synchronous>, transform_indices = @transform_2, window_bounds = array<i64: 32, 64>}, {pipeline_mode = #tpu.pipeline_mode<synchronous>, transform_indices = @transform_3, window_bounds = array<i64: 32, 16>}, {pipeline_mode = #tpu.pipeline_mode<synchronous>, transform_indices = @transform_4, window_bounds = array<i64: 1, 32>}, {transform_indices = @transform_5, window_bounds = array<i64: 1, 8, 16>}]} {
    %c0_i32 = arith.constant 0 : i32
    %0 = arith.cmpi eq, %arg1, %c0_i32 : i32
    %1 = arith.extui %0 : i1 to i32
    %c0_i32_0 = arith.constant 0 : i32
    %2 = arith.cmpi ne, %1, %c0_i32_0 : i32
    scf.if %2 {
      %cst_34 = arith.constant 0.000000e+00 : f32
      %92 = vector.broadcast %cst_34 : f32 to vector<1x32xf32>
      %c0_35 = arith.constant 0 : index
      %c0_36 = arith.constant 0 : index
      %93 = vector.load %arg8[%c0_35, %c0_36] : memref<1x32xf32, #tpu.memory_space<vmem>>, vector<1x32xf32>
      tpu.vector_store %arg8[%c0_35, %c0_36], %92 {strides = array<i32>} : memref<1x32xf32, #tpu.memory_space<vmem>>, vector<1x32xf32>,
    } else {
    }
    %c0 = arith.constant 0 : index
    %c0_1 = arith.constant 0 : index
    %c0_2 = arith.constant 0 : index
    %3 = vector.load %arg2[%c0, %c0_1, %c0_2] : memref<1x8x16xf32, #tpu.memory_space<vmem>>, vector<1x8x16xf32>
    %4 = vector.shape_cast %3 : vector<1x8x16xf32> to vector<8x16xf32>
    %5 = arith.truncf %4 : vector<8x16xf32> to vector<8x16xbf16>
    %c0_3 = arith.constant 0 : index
    %c0_4 = arith.constant 0 : index
    %6 = vector.load %arg3[%c0_3, %c0_4] : memref<16x64xbf16, #tpu.memory_space<vmem>>, vector<16x64xbf16>
    %cst = arith.constant dense<0.000000e+00> : vector<8x64xf32>
    %7 = tpu.matmul %5, %6, %cst {dimension_numbers = #tpu.dot_dimension_numbers<[1], [0], [0], [1], [0, 0, 1, 1], [], []>} : vector<8x16xbf16>, vector<16x64xbf16>, vector<8x64xf32> -> vector<8x64xf32>
    %8 = vector.extract_strided_slice %7 {offsets = [0, 0], sizes = [8, 32], strides = [1, 1]} : vector<8x64xf32> to vector<8x32xf32>
    %9 = vector.extract_strided_slice %7 {offsets = [0, 32], sizes = [8, 32], strides = [1, 1]} : vector<8x64xf32> to vector<8x32xf32>
    %10 = arith.truncf %8 : vector<8x32xf32> to vector<8x32xbf16>
    %c0_5 = arith.constant 0 : index
    %c0_6 = arith.constant 0 : index
    %11 = vector.load %arg4[%c0_5, %c0_6] : memref<32x64xbf16, #tpu.memory_space<vmem>>, vector<32x64xbf16>
    %cst_7 = arith.constant dense<0.000000e+00> : vector<8x64xf32>
    %12 = tpu.matmul %10, %11, %cst_7 {dimension_numbers = #tpu.dot_dimension_numbers<[1], [0], [0], [1], [0, 0, 1, 1], [], []>} : vector<8x32xbf16>, vector<32x64xbf16>, vector<8x64xf32> -> vector<8x64xf32>
    %13 = arith.negf %12 : vector<8x64xf32>
    %14 = math.exp %13 : vector<8x64xf32>
    %cst_8 = arith.constant 1.000000e+00 : f32
    %15 = vector.broadcast %cst_8 : f32 to vector<8x64xf32>
    %16 = arith.addf %15, %14 : vector<8x64xf32>
    %17 = arith.divf %15, %16 : vector<8x64xf32>
    %18 = vector.extract_strided_slice %17 {offsets = [0, 0], sizes = [8, 32], strides = [1, 1]} : vector<8x64xf32> to vector<8x32xf32>
    %19 = vector.extract_strided_slice %17 {offsets = [0, 32], sizes = [8, 32], strides = [1, 1]} : vector<8x64xf32> to vector<8x32xf32>
    %cst_9 = arith.constant -8.000000e+00 : f32
    %20 = vector.broadcast %cst_9 : f32 to vector<8x32xf32>
    %21 = arith.mulf %20, %19 : vector<8x32xf32>
    %c0_10 = arith.constant 0 : index
    %c0_11 = arith.constant 0 : index
    %22 = vector.load %arg6[%c0_10, %c0_11] : memref<1x32xf32, #tpu.memory_space<vmem>>, vector<1x32xf32>
    %23 = vector.broadcast %22 : vector<1x32xf32> to vector<8x32xf32>
    %24 = arith.mulf %21, %23 : vector<8x32xf32>
    %25 = math.exp %24 : vector<8x32xf32>
    %26 = arith.mulf %25, %25 : vector<8x32xf32>
    %cst_12 = arith.constant 1.000000e+00 : f32
    %27 = vector.broadcast %cst_12 : f32 to vector<8x32xf32>
    %28 = arith.subf %27, %26 : vector<8x32xf32>
    %29 = math.sqrt %28 : vector<8x32xf32>
    %30 = arith.mulf %29, %18 : vector<8x32xf32>
    %31 = arith.mulf %30, %8 : vector<8x32xf32>
    %c0_13 = arith.constant 0 : index
    %c0_14 = arith.constant 0 : index
    %32 = vector.load %arg9[%c0_13, %c0_14] : memref<8x32xf32, #tpu.memory_space<vmem>>, vector<8x32xf32>
    tpu.vector_store %arg9[%c0_13, %c0_14], %25 {strides = array<i32>} : memref<8x32xf32, #tpu.memory_space<vmem>>, vector<8x32xf32>,
    %c0_15 = arith.constant 0 : index
    %c0_16 = arith.constant 0 : index
    %33 = vector.load %arg10[%c0_15, %c0_16] : memref<8x32xf32, #tpu.memory_space<vmem>>, vector<8x32xf32>
    tpu.vector_store %arg10[%c0_15, %c0_16], %31 {strides = array<i32>} : memref<8x32xf32, #tpu.memory_space<vmem>>, vector<8x32xf32>,
    %c0_17 = arith.constant 0 : index
    %c0_18 = arith.constant 0 : index
    %34 = vector.load %arg8[%c0_17, %c0_18] : memref<1x32xf32, #tpu.memory_space<vmem>>, vector<1x32xf32>
    %c0_i32_19 = arith.constant 0 : i32
    %c8_i32 = arith.constant 8 : i32
    %35 = arith.muli %c0_i32_19, %c8_i32 : i32
    %36 = tpu.assume_multiple %35, 8 : i32
    %37 = arith.index_cast %36 : i32 to index
    %c0_20 = arith.constant 0 : index
    %38 = vector.load %arg9[%37, %c0_20] : memref<8x32xf32, #tpu.memory_space<vmem>>, vector<8x32xf32>
    %39 = arith.index_cast %36 : i32 to index
    %c0_21 = arith.constant 0 : index
    %40 = vector.load %arg10[%39, %c0_21] : memref<8x32xf32, #tpu.memory_space<vmem>>, vector<8x32xf32>
    %41 = vector.extract_strided_slice %38 {offsets = [0, 0], sizes = [1, 32], strides = [1, 1]} : vector<8x32xf32> to vector<1x32xf32>
    %42 = arith.mulf %41, %34 : vector<1x32xf32>
    %43 = vector.extract_strided_slice %40 {offsets = [0, 0], sizes = [1, 32], strides = [1, 1]} : vector<8x32xf32> to vector<1x32xf32>
    %44 = arith.addf %42, %43 : vector<1x32xf32>
    %45 = vector.extract_strided_slice %38 {offsets = [1, 0], sizes = [1, 32], strides = [1, 1]} : vector<8x32xf32> to vector<1x32xf32>
    %46 = arith.mulf %45, %44 : vector<1x32xf32>
    %47 = vector.extract_strided_slice %40 {offsets = [1, 0], sizes = [1, 32], strides = [1, 1]} : vector<8x32xf32> to vector<1x32xf32>
    %48 = arith.addf %46, %47 : vector<1x32xf32>
    %49 = vector.extract_strided_slice %38 {offsets = [2, 0], sizes = [1, 32], strides = [1, 1]} : vector<8x32xf32> to vector<1x32xf32>
    %50 = arith.mulf %49, %48 : vector<1x32xf32>
    %51 = vector.extract_strided_slice %40 {offsets = [2, 0], sizes = [1, 32], strides = [1, 1]} : vector<8x32xf32> to vector<1x32xf32>
    %52 = arith.addf %50, %51 : vector<1x32xf32>
    %53 = vector.extract_strided_slice %38 {offsets = [3, 0], sizes = [1, 32], strides = [1, 1]} : vector<8x32xf32> to vector<1x32xf32>
    %54 = arith.mulf %53, %52 : vector<1x32xf32>
    %55 = vector.extract_strided_slice %40 {offsets = [3, 0], sizes = [1, 32], strides = [1, 1]} : vector<8x32xf32> to vector<1x32xf32>
    %56 = arith.addf %54, %55 : vector<1x32xf32>
    %57 = vector.extract_strided_slice %38 {offsets = [4, 0], sizes = [1, 32], strides = [1, 1]} : vector<8x32xf32> to vector<1x32xf32>
    %58 = arith.mulf %57, %56 : vector<1x32xf32>
    %59 = vector.extract_strided_slice %40 {offsets = [4, 0], sizes = [1, 32], strides = [1, 1]} : vector<8x32xf32> to vector<1x32xf32>
    %60 = arith.addf %58, %59 : vector<1x32xf32>
    %61 = vector.extract_strided_slice %38 {offsets = [5, 0], sizes = [1, 32], strides = [1, 1]} : vector<8x32xf32> to vector<1x32xf32>
    %62 = arith.mulf %61, %60 : vector<1x32xf32>
    %63 = vector.extract_strided_slice %40 {offsets = [5, 0], sizes = [1, 32], strides = [1, 1]} : vector<8x32xf32> to vector<1x32xf32>
    %64 = arith.addf %62, %63 : vector<1x32xf32>
    %65 = vector.extract_strided_slice %38 {offsets = [6, 0], sizes = [1, 32], strides = [1, 1]} : vector<8x32xf32> to vector<1x32xf32>
    %66 = arith.mulf %65, %64 : vector<1x32xf32>
    %67 = vector.extract_strided_slice %40 {offsets = [6, 0], sizes = [1, 32], strides = [1, 1]} : vector<8x32xf32> to vector<1x32xf32>
    %68 = arith.addf %66, %67 : vector<1x32xf32>
    %69 = vector.extract_strided_slice %38 {offsets = [7, 0], sizes = [1, 32], strides = [1, 1]} : vector<8x32xf32> to vector<1x32xf32>
    %70 = arith.mulf %69, %68 : vector<1x32xf32>
    %71 = vector.extract_strided_slice %40 {offsets = [7, 0], sizes = [1, 32], strides = [1, 1]} : vector<8x32xf32> to vector<1x32xf32>
    %72 = arith.addf %70, %71 : vector<1x32xf32>
    %73 = tpu.concatenate %44, %48, %52, %56, %60, %64, %68, %72 in 0 : vector<1x32xf32>, vector<1x32xf32>, vector<1x32xf32>, vector<1x32xf32>, vector<1x32xf32>, vector<1x32xf32>, vector<1x32xf32>, vector<1x32xf32> -> vector<8x32xf32>
    %74 = arith.index_cast %36 : i32 to index
    %c0_22 = arith.constant 0 : index
    %75 = vector.load %arg11[%74, %c0_22] : memref<8x32xf32, #tpu.memory_space<vmem>>, vector<8x32xf32>
    tpu.vector_store %arg11[%74, %c0_22], %73 {strides = array<i32>} : memref<8x32xf32, #tpu.memory_space<vmem>>, vector<8x32xf32>,
    %c1_i32 = arith.constant 1 : i32
    %c0_23 = arith.constant 0 : index
    %c0_24 = arith.constant 0 : index
    %76 = vector.load %arg8[%c0_23, %c0_24] : memref<1x32xf32, #tpu.memory_space<vmem>>, vector<1x32xf32>
    tpu.vector_store %arg8[%c0_23, %c0_24], %72 {strides = array<i32>} : memref<1x32xf32, #tpu.memory_space<vmem>>, vector<1x32xf32>,
    %c0_25 = arith.constant 0 : index
    %c0_26 = arith.constant 0 : index
    %77 = vector.load %arg11[%c0_25, %c0_26] : memref<8x32xf32, #tpu.memory_space<vmem>>, vector<8x32xf32>
    %78 = arith.negf %9 : vector<8x32xf32>
    %79 = math.exp %78 : vector<8x32xf32>
    %cst_27 = arith.constant 1.000000e+00 : f32
    %80 = vector.broadcast %cst_27 : f32 to vector<8x32xf32>
    %81 = arith.addf %80, %79 : vector<8x32xf32>
    %82 = arith.divf %80, %81 : vector<8x32xf32>
    %83 = arith.mulf %9, %82 : vector<8x32xf32>
    %84 = arith.mulf %77, %83 : vector<8x32xf32>
    %85 = arith.truncf %84 : vector<8x32xf32> to vector<8x32xbf16>
    %c0_28 = arith.constant 0 : index
    %c0_29 = arith.constant 0 : index
    %86 = vector.load %arg5[%c0_28, %c0_29] : memref<32x16xbf16, #tpu.memory_space<vmem>>, vector<32x16xbf16>
    %cst_30 = arith.constant dense<0.000000e+00> : vector<8x16xf32>
    %87 = tpu.matmul %85, %86, %cst_30 {dimension_numbers = #tpu.dot_dimension_numbers<[1], [0], [0], [1], [0, 0, 1, 1], [], []>} : vector<8x32xbf16>, vector<32x16xbf16>, vector<8x16xf32> -> vector<8x16xf32>
    %88 = arith.addf %4, %87 : vector<8x16xf32>
    %c0_31 = arith.constant 0 : index
    %c0_32 = arith.constant 0 : index
    %c0_33 = arith.constant 0 : index
    %89 = vector.load %arg7[%c0_31, %c0_32, %c0_33] : memref<1x8x16xf32, #tpu.memory_space<vmem>>, vector<1x8x16xf32>
    %90 = vector.shape_cast %89 : vector<1x8x16xf32> to vector<8x16xf32>
    %91 = vector.shape_cast %88 : vector<8x16xf32> to vector<1x8x16xf32>
    tpu.vector_store %arg7[%c0_31, %c0_32, %c0_33], %91 {strides = array<i32>} : memref<1x8x16xf32, #tpu.memory_space<vmem>>, vector<1x8x16xf32>,
    return
  }
  func.func @transform_0(%arg0: i32, %arg1: i32) -> (i32, i32, i32) {
    %c0_i32 = arith.constant 0 : i32
    %c0_i32_0 = arith.constant 0 : i32
    return %arg0, %arg1, %c0_i32 : i32, i32, i32
  }
  func.func @transform_1(%arg0: i32, %arg1: i32) -> (i32, i32) {
    %c0_i32 = arith.constant 0 : i32
    %c0_i32_0 = arith.constant 0 : i32
    %c0_i32_1 = arith.constant 0 : i32
    return %c0_i32, %c0_i32_0 : i32, i32
  }
  func.func @transform_2(%arg0: i32, %arg1: i32) -> (i32, i32) {
    %c0_i32 = arith.constant 0 : i32
    %c0_i32_0 = arith.constant 0 : i32
    %c0_i32_1 = arith.constant 0 : i32
    return %c0_i32, %c0_i32_0 : i32, i32
  }
  func.func @transform_3(%arg0: i32, %arg1: i32) -> (i32, i32) {
    %c0_i32 = arith.constant 0 : i32
    %c0_i32_0 = arith.constant 0 : i32
    %c0_i32_1 = arith.constant 0 : i32
    return %c0_i32, %c0_i32_0 : i32, i32
  }
  func.func @transform_4(%arg0: i32, %arg1: i32) -> (i32, i32) {
    %c0_i32 = arith.constant 0 : i32
    %c0_i32_0 = arith.constant 0 : i32
    %c0_i32_1 = arith.constant 0 : i32
    return %c0_i32, %c0_i32_0 : i32, i32
  }
  func.func @transform_5(%arg0: i32, %arg1: i32) -> (i32, i32, i32) {
    %c0_i32 = arith.constant 0 : i32
    %c0_i32_0 = arith.constant 0 : i32
    return %arg0, %arg1, %c0_i32 : i32, i32, i32
  }
}

</mosaic_0001>

<bundles_post_ra>
// kernel: tpu_custom_call.1
= control target key start
LH: loop header
LB: loop body
LE: loop exit
PB: predicated region body
PF: predicated region fallthrough
CT: control target
= control target key end

     0   :  { %10 = vsyncpa [#allocation7], 0  ;;  %s1139_s0 = inlined_call_operand.vmem [shape: f32[2,8,16], index: 0, kind: input, shape index: {}]   ;;  %s1140_s1 = inlined_call_operand.vmem [shape: bf16[16,64], index: 1, kind: input, shape index: {}]   ;;  %s1141_s2 = inlined_call_operand.hbm [shape: bf16[32,64], index: 2, kind: input, shape index: {}]   ;;  %s1142_s3 = inlined_call_operand.vmem [shape: bf16[32,16], index: 3, kind: input, shape index: {}]   ;;  %s1143_s4 = inlined_call_operand.vmem [shape: f32[1,32], index: 4, kind: input, shape index: {}]   ;;  %s1144_s5 = inlined_call_operand.hbm [shape: f32[2,8,16], index: 5, kind: output, shape index: {}]  }
   0x1   :  { %11 = vsyncpa [#allocation8], 0 }
   0x2   :  { %13 = vsyncpa [#allocation8 + $0x1], 0  ;;  %s953_s18 = smov 0   ;;  %s955_s19 = smov 0  }
   0x3   :  { %s957_s20 = smov 0   ;;  %s959_s21 = smov 0  }
   0x4   :  { %s961_s22 = smov 0   ;;  %s963_s23 = smov 0  }
   0x5 LB: > { %s660_s24 = sadd.s32 4294967295, %s913_s23   ;;  %s661_s25 = sadd.s32 4294967294, %s913_s23   ;;  %s913_s23 = sphi %s963_s23, %s19_s23   ;;  %s909_s22 = sphi %s961_s22, %s1162_s22   ;;  %s905_s21 = sphi %s959_s21, %s1161_s21   ;;  %s901_s20 = sphi %s957_s20, %s1160_s20   ;;  %s897_s19 = sphi %s955_s19, %s1159_s19   ;;  %s893_s18 = sphi %s953_s18, %s1158_s18  }
   0x6   : > { %s31_s26 = sadd.s32 1, %s909_s22  ;;  %s152_s27 = sadd.s32 1, %s901_s20 }
   0x7   : > { %p33_p0 = scmp.ge.s32.totalorder %s31_s26, 2  ;;  %p162_p1 = scmp.ne.s32.totalorder %s901_s20, %s897_s19 }
   0x8   : > { %p163_p2 = scmp.eq.s32.totalorder %s660_s24, 1  ;;  %p168_p3 = scmp.ne.s32.totalorder %s897_s19, %s893_s18 }
   0x9   : > { %s1164_s26 = smov (%p33_p0, %s31_s26), 0  ;;  %p169_p5 = scmp.eq.s32.totalorder %s661_s25, 1 }
   0xa   : > { %p993_p4 = por %p163_p2, %p162_p1  ;;  %s147_s29 = ssub.s32 %s909_s22, %s1164_s26 }
   0xb   : > { %p662_p6 = scmp.ge.s32.totalorder %s913_s23, 1  ;;  %p150_p7 = scmp.eq.s32.totalorder %s147_s29, 0 }
   0xc   : > { %s1149_s28 = scalar_select %p993_p4, 1, 0 }
   0xd   : > { %p1000_p8 = por %p169_p5, %p168_p3  ;;  %p176_p9 = scmp.lt.s32.totalorder %s913_s23, 3 }
   0xe   : > { %s1006_s6 = scalar_select %p150_p7, %s901_s20, %s152_s27  }
   0xf   : > { %s1150_s30 = scalar_select %p1000_p8, 1, 0 }
  0x10   : > { %p1008_p10 = pnand %p662_p6, %p176_p9  ;;  %p1012_p11 = scmp.eq.s32.totalorder %s660_s24, 0 }
  0x11   : > { %s915_s9 = smov [#allocation6]   ;;  %s803_s14 = scalar_lea.hbm %s1141_s2, 256 }
  0x12   : > { %s1151_s7 = scalar_select %p1008_p10, 1, 0 }
  0x13   : > { %s1152_s8 = scalar_select %p1012_p11, 1, 0 }
  0x14   : > { %p720_p12 = pneg %p1008_p10  ;;  %s191_s10 = sshll.u32 %s915_s9, 4  ;;  %s192_s10 = int_to_ptr.vmem [resolvable:$true] %s191_s10 }
  0x15   : > { %p804_p0 = scmp.ne.s32.totalorder %s1141_s2, %s803_s14  ;;  %p810_p5 = scmp.lt.u32.totalorder %s803_s14, %s1141_s2 }
  0x16   : > { %p1020_p13 = pnand %p1012_p11, %p720_p12 }
  0x18   : > { %p805_p1 = pneg %p1020_p13 }
  0x1a   : > { %p806_p2 = pnand %p805_p1, %p804_p0 }
  0x1c   : > { %p807_p3 = pneg %p806_p2 }
  0x1e   : > { %p812_p6 = pnand %p810_p5, %p807_p3 }
  0x20   : > { %815 = shalt.err (!%p812_p6)
}
  0x21   : > { %s816_s25 = scalar_lea.vmem %s192_s10, 256  ;;  %p824_p8 = scmp.lt.s32.totalorder %s192_s10, %s192_s10 }
  0x22   : > { %p817_p7 = scmp.ne.s32.totalorder %s192_s10, %s816_s25  ;;  %p825_p4 = scmp.lt.s32.totalorder %s816_s25, %s816_s25 }
  0x24   : > { %p819_p9 = pnand %p817_p7, %p805_p1  ;;  %p826_p11 = por %p825_p4, %p824_p8 }
  0x26   : > { %p820_p12 = pneg %p819_p9 }
  0x28   : > { %p827_p10 = pnand %p826_p11, %p820_p12 }
  0x2a   : > { %830 = shalt.err (!%p827_p10)
}
  0x2b   : > { %s916_s27 = smov 64   ;;  %s917_s29 = smov 4  }
  0x2c   : > { %723 = dma.hbm_to_vmem [thread:$0]  (!%p1020_p13), %s1141_s2, 256, %s192_s10, [#allocation7], %s916_s27, %s916_s27, %s917_s29  }
  0x2d   : > { %p1154_p0 = scmp.ne.s32.totalorder %s1151_s7, 0 }
  0x2e   : > { %p1155_p2 = scmp.ne.s32.totalorder (!%p1154_p0), %s1152_s8, 0 }
  0x2f   : > { %223 = sbr.rel (%p1154_p0) target bundleno = 1043 (0x413), region = 40 }
  0x36   : > { %884 = dma.done.wait (%p1155_p2), [#allocation7], 256  }
  0x37   : > { %886 = vsyncadd (%p1155_p2), [#allocation7], 4294967040  ;;  %vm265_vm0 = vcmask 253952   ;;  %p253_p4 = scmp.lt.s32.totalorder %s905_s21, 1  ;;  %v918_v0 = vmov 0.0   ;;  %vm919_vm1 = vmmov 0  }
  0x38   : > { %266 = vst.msk [vmem:[#allocation2] sm:$0x1] %vm265_vm0, %v918_v0  ;;  %692 = vmatprep.subr.bf16.mxu0 %v918_v0  ;;  %694 = vmatprep.mubr.msk.bf16.mxu0 %vm919_vm1, %v918_v0  ;;  %v786_v1 = vld [vmem:[%s1140_s1] sm:$0xff]   ;;  %vm277_vm2 = vcmask 130048   ;;  %s920_s24 = smov 32   ;;  %vm338_vm3 = vcmask 261120  }
  0x39   : > { %s254_s7 = scalar_select %p253_p4, %s905_s21, 1  ;;  %698 = vmatprep.subr.bf16.mxu1 %v918_v0  ;;  %702 = vmatprep.mubr.msk.bf16.mxu1 %vm919_vm1, %v918_v0  ;;  %v787_v4 = vld [vmem:[#allocation6] sm:$0xff]   ;;  %v788_v5 = vld [vmem:[#allocation6 + $0x8] sm:$0xff]   ;;  %vm470_vm6 = vcmask 1040384   ;;  %vm472_vm7 = vcmask 1041408   ;;  %vm474_vm8 = vcmask 1042432  }
  0x3a   : > { %693 = vmatpush3.bf16.msra.mxu0 %v786_v1  ;;  %699 = vmatpush3.bf16.msra.mxu1 %v787_v4  ;;  %v675_v6 = vld [vmem:[%s1143_s4] ss:$0 sm:$0xff]  ;;  %s921_s25 = smov 96   ;;  %v790_v43 = vld [vmem:[%s1142_s3 + $0x8] sm:$0xff]   ;;  %vm476_vm9 = vcmask 1043456   ;;  %vm478_vm10 = vcmask 1044480  }
  0x3b   : > { %s668_s8 = sshll.u32 %s254_s7, 3  ;;  %706 = vmatprep.subr.bf16.mxu0 %v918_v0  ;;  %700 = vmatprep.subr.bf16.mxu1 %v918_v0  ;;  %v789_v42 = vld [vmem:[%s1142_s3] sm:$0xff]   ;;  %vm480_vm11 = vcmask 1045504   ;;  %vm485_vm12 = vcmask 261127   ;;  %vm482_vm13 = vcmask 1046528   ;;  %s250_s7 = sand.u32 1, %s897_s19  }
  0x3c   : > { %s259_s13 = scalar_lea.vmem %s1139_s0, %s668_s8  ;;  %395 = vrot.lane.b32.xlu0 %v675_v6, %s920_s24  ;;  %s667_s8 = sshll.u32 %s250_s7, 3 }
  0x3d   : > { %v1061_v2 = vld [vmem:[%s259_s13] sm:$0xff]  ;;  %s681_s10 = sshll.u32 %s905_s21, 7  ;;  %s252_s11 = scalar_lea.vmem [#allocation9], %s667_s8 }
  0x3e   : > { %v268_v3 = vpack.c.bf16 %v1061_v2, %v1061_v2  ;;  %701 = vmatpush3.bf16.msra.mxu1 %v788_v5  ;;  %s577_s13 = sshll.u32 %s252_s11, 4  ;;  %s1091_s16 = scalar_lea.hbm %s1144_s5, %s681_s10  ;;  %s1093_s13 = int_to_ptr.vmem [resolvable:$true] %s577_s13 }
  0x3f   : > { %v430_v45 = vld [vmem:[#allocation2] sm:$0x1]  ;;  %s563_s21 = scalar_lea.sflag [#allocation8], %s250_s7  ;;  %s831_s17 = scalar_lea.vmem %s1093_s13, 128 }
  0x40   : > { %695 = vmatmul.mubr.msk.bf16.vlgmr.msra.gmra.mrb[0].mxu0 %vm277_vm2, %v268_v3  ;;  %p832_p8 = scmp.ne.s32.totalorder %s1093_s13, %s831_s17  ;;  %p1156_p10 = scmp.ne.s32.totalorder %s1149_s28, 0 }
  0x41   : > { %710 = vmatprep.mubr.msk.bf16.mxu0 %vm919_vm1, %v918_v0  ;;  %707 = vmatpush3.bf16.msra.mxu0 %v789_v42 }
  0x42   : > { %708 = vmatprep.subr.bf16.mxu0 %v918_v0  ;;  %p833_p11 = pnand %p832_p8, %p1156_p10 }
  0x44   : > { %p834_p13 = pneg %p833_p11 }
  0x45   : > { %709 = vmatpush3.bf16.msra.mxu0 %v790_v43 }
  0xae   : > { %v396_v22 = vpop.permute.xlu0 %395 }
 0x113   : > { %v315_v7 = vpop.f32.mrb[0].mxu0 }
 0x114   : > { %v321_v8 = vpack.c.bf16 %v315_v7, %v315_v7  ;;  %416 = vrot.lane.b32.xlu1 %v315_v7, %s920_s24  ;;  %v696_v9 = vpop.f32.mrb[1].mxu0  ;;  %v676_v17 = vmul.f32 -1.442695, %v315_v7 }
 0x115   : > { %v318_v10 = vpop.f32.mrb[2].mxu0 }
 0x116   : > { %v697_v11 = vpop.f32.mrb[3].mxu0  ;;  %703 = vmatmul.mubr.msk.bf16.vlgmr.msra.gmra.mrb[0].mxu1 %vm338_vm3, %v321_v8 }
 0x186   : > { %v417_v39 = vpop.permute.xlu1 %416 }
 0x1e9   : > { %v376_v12 = vpop.f32.mrb[0].mxu1 }
 0x1ea   : > { %v674_v13 = vmul.f32 -1.442695, %v376_v12  ;;  %v704_v14 = vpop.f32.mrb[1].mxu1 }
 0x1eb   : > { %v379_v15 = vpop.f32.mrb[2].mxu1 }
 0x1ec   : > { %791 = vpow2.f32 %v674_v13  ;;  %v705_v16 = vpop.f32.mrb[3].mxu1 }
 0x1ed   : > { %793 = vpow2.f32 %v676_v17 }
 0x1f6   : > { %v792_v18 = vpop.eup %791 }
 0x1f7   : > { %v385_v19 = vadd.f32 1.0, %v792_v18  ;;  %v794_v20 = vpop.eup %793 }
 0x1f8   : > { %v491_v24 = vadd.f32 1.0, %v794_v20 }
 0x1f9   : > { %795 = vrcp.f32 %v385_v19 }
 0x1fa   : > { %797 = vrcp.f32 %v491_v24 }
 0x203   : > { %v796_v21 = vpop.eup %795 }
 0x204   : > { %411 = vrot.lane.b32.xlu0 %v796_v21, %s920_s24  ;;  %v388_v23 = vmul.f32 -8.0, %v796_v21  ;;  %v798_v27 = vpop.eup %797  ;;  %s922_s24 = smov [#allocation9]  }
 0x205   : > { %v494_v29 = vmul.f32 %v798_v27, %v315_v7 }
 0x206   : > { %v398_v25 = vmul.f32 %v396_v22, %v388_v23 }
 0x208   : > { %v399_v26 = vmul.f32 1.442695, %v398_v25 }
 0x20a   : > { %799 = vpow2.f32 %v399_v26 }
 0x214   : > { %v800_v28 = vpop.eup %799 }
 0x215   : > { %421 = vrot.lane.b32.xlu1 %v800_v28, %s921_s25  ;;  %v401_v30 = vmul.f32 %v800_v28, %v800_v28 }
 0x217   : > { %v402_v31 = vsub.f32 1.0, %v401_v30 }
 0x219   : > { %496 = vrot.lane.b32.xlu1 %v494_v29, %s921_s25  ;;  %801 = vrsqrt.f32 %v402_v31  ;;  %vm405_vm4 = vcmp.eq.f32.partialorder %v402_v31, inf  ;;  %v408_v35 = vand.u32 2147483648, %v402_v31  ;;  %vm407_vm5 = vcmp.eq.f32.partialorder %v402_v31, 0.0 }
 0x223   : > { %v802_v32 = vpop.eup %801 }
 0x224   : > { %v404_v33 = vmul.f32 %v802_v32, %v402_v31 }
 0x226   : > { %v406_v34 = vsel %vm405_vm4, %v402_v31, %v404_v33 }
 0x227   : > { %v409_v37 = vsel %vm407_vm5, %v408_v35, %v406_v34 }
 0x276   : > { %v412_v36 = vpop.permute.xlu0 %411 }
 0x277   : > { %v414_v38 = vmul.f32 %v412_v36, %v409_v37 }
 0x279   : > { %v419_v40 = vmul.f32 %v417_v39, %v414_v38 }
 0x27b   : > { %426 = vrot.lane.b32.xlu0 %v419_v40, %s921_s25  ;;  %s835_s25 = sshll.u32 %s922_s24, 4  ;;  %s836_s25 = int_to_ptr.vmem [resolvable:$false] %s835_s25 }
 0x27c   : > { %s837_s27 = scalar_lea.vmem %s836_s25, 256  ;;  %p838_p1 = scmp.lt.s32.totalorder %s1093_s13, %s836_s25 }
 0x27d   : > { %p839_p3 = scmp.lt.s32.totalorder %s837_s27, %s831_s17 }
 0x27f   : > { %p840_p5 = por %p839_p3, %p838_p1 }
 0x281   : > { %p841_p6 = pnand %p840_p5, %p834_p13 }
 0x287   : > { %v422_v41 = vpop.permute.xlu1 %421 }
 0x288   : > { %424 = vst.msk [vmem:[#allocation3] sm:$0xff] %vm338_vm3, %v422_v41 }
 0x28b   : > { %v497_v15 = vpop.permute.xlu1 %496 }
 0x28f   : > { %v431_v46 = vld [vmem:[#allocation3] sm:$0xff] }
 0x290   : > { %v433_v47 = vmul.f32 %v431_v46, %v430_v45 }
 0x2ed   : > { %v427_v44 = vpop.permute.xlu0 %426 }
 0x2ee   : > { %429 = vst.msk [vmem:[#allocation4] sm:$0xff] %vm338_vm3, %v427_v44 }
 0x2f5   : > { %v432_v48 = vld [vmem:[#allocation4] sm:$0xff] }
 0x2f6   : > { %v434_v49 = vadd.f32 %v433_v47, %v432_v48 }
 0x2f8   : > { %v436_v50 = vrot.slane %v434_v49, 7 }
 0x2fa   : > { %v438_v51 = vmul.f32 %v436_v50, %v431_v46 }
 0x2fc   : > { %v439_v52 = vadd.f32 %v438_v51, %v432_v48 }
 0x2fe   : > { %v441_v53 = vrot.slane %v439_v52, 7  ;;  %v471_v6 = vsel %vm470_vm6, %v434_v49, %v439_v52 }
 0x300   : > { %v443_v54 = vmul.f32 %v441_v53, %v431_v46 }
 0x302   : > { %v444_v55 = vadd.f32 %v443_v54, %v432_v48 }
 0x304   : > { %v446_v56 = vrot.slane %v444_v55, 7  ;;  %v473_v7 = vsel %vm472_vm7, %v471_v6, %v444_v55 }
 0x306   : > { %v448_v57 = vmul.f32 %v446_v56, %v431_v46 }
 0x308   : > { %v449_v58 = vadd.f32 %v448_v57, %v432_v48 }
 0x30a   : > { %v451_v59 = vrot.slane %v449_v58, 7  ;;  %v475_v9 = vsel %vm474_vm8, %v473_v7, %v449_v58 }
 0x30c   : > { %v453_v60 = vmul.f32 %v451_v59, %v431_v46 }
 0x30e   : > { %v454_v61 = vadd.f32 %v453_v60, %v432_v48 }
 0x310   : > { %v456_v62 = vrot.slane %v454_v61, 7  ;;  %v477_v10 = vsel %vm476_vm9, %v475_v9, %v454_v61 }
 0x312   : > { %v458_v63 = vmul.f32 %v456_v62, %v431_v46 }
 0x314   : > { %v459_v0 = vadd.f32 %v458_v63, %v432_v48 }
 0x316   : > { %v461_v1 = vrot.slane %v459_v0, 7  ;;  %v479_v12 = vsel %vm478_vm10, %v477_v10, %v459_v0 }
 0x318   : > { %v463_v3 = vmul.f32 %v461_v1, %v431_v46 }
 0x31a   : > { %v464_v4 = vadd.f32 %v463_v3, %v432_v48 }
 0x31c   : > { %v466_v5 = vrot.slane %v464_v4, 7  ;;  %v481_v13 = vsel %vm480_vm11, %v479_v12, %v464_v4 }
 0x31e   : > { %v468_v8 = vmul.f32 %v466_v5, %v431_v46 }
 0x320   : > { %v469_v11 = vadd.f32 %v468_v8, %v432_v48 }
 0x322   : > { %486 = vst.msk [vmem:[#allocation2 - $0x7] sm:$0x80] %vm485_vm12, %v469_v11  ;;  %v483_v14 = vsel %vm482_vm13, %v481_v13, %v469_v11 }
 0x323   : > { %484 = vst.msk [vmem:[#allocation5] sm:$0xff] %vm338_vm3, %v483_v14 }
 0x32a   : > { %v487_v16 = vld [vmem:[#allocation5] sm:$0xff] }
 0x32b   : > { %v499_v17 = vmul.f32 %v497_v15, %v487_v16 }
 0x32d   : > { %v500_v18 = vpack.c.bf16 %v499_v17, %v499_v17 }
 0x32f   : > { %711 = vmatmul.mubr.msk.bf16.vlgmr.msra.gmra.mrb[4].mxu0 %vm338_vm3, %v500_v18 }
 0x402   : > { %v554_v19 = vpop.f32.mrb[4].mxu0 }
 0x403   : > { %v560_v20 = vadd.f32 %v554_v19, %v1061_v2  ;;  %v712_v21 = vpop.f32.mrb[5].mxu0 }
 0x404   : > { %v557_v22 = vpop.f32.mrb[6].mxu0 }
 0x405   : > { %v713_v23 = vpop.f32.mrb[7].mxu0  ;;  %561 = vst.msk [vmem:[%s252_s11] sm:$0xff] %vm277_vm2, %v560_v20 }
 0x406   : > { %844 = shalt.err (!%p841_p6)
}
 0x407   : > { %s845_s29 = scalar_lea.hbm %s1091_s16, 128  ;;  %s849_s7 = scalar_lea.hbm %s1144_s5, 256 }
 0x408   : > { %p846_p7 = scmp.ne.s32.totalorder %s1091_s16, %s845_s29  ;;  %p850_p0 = scmp.lt.u32.totalorder %s1091_s16, %s1144_s5 }
 0x409   : > { %p851_p2 = scmp.lt.u32.totalorder %s849_s7, %s845_s29  ;;  %p853_p8 = scmp.lt.u32.totalorder %s845_s29, %s1091_s16 }
 0x40a   : > { %p847_p9 = pnand %p846_p7, %p1156_p10 }
 0x40b   : > { %p852_p4 = por %p851_p2, %p850_p0 }
 0x40c   : > { %p848_p12 = pneg %p847_p9 }
 0x40d   : > { %p854_p11 = por %p853_p8, %p852_p4 }
 0x40f   : > { %p855_p13 = pnand %p854_p11, %p848_p12 }
 0x411   : > { %858 = shalt.err (!%p855_p13)
}
 0x412   : > { %718 = dma.vmem_to_hbm [thread:$0]  (%p1156_p10), %s1093_s13, 128, %s1091_s16, %s563_s21  }
 0x413 PF: > { %p730_p1 = scmp.ge.s32.totalorder %s913_s23, 2  ;;  %s589_s11 = sand.u32 1, %s893_s18  }
 0x414   : > { %p1157_p3 = scmp.ne.s32.totalorder %s1150_s30, 0  ;;  %s590_s14 = scalar_lea.sflag [#allocation8], %s589_s11 }
 0x416   : > { %p725_p5 = pnand %p730_p1, %p1157_p3 }
 0x418   : > { %888 = dma.done.wait (!%p725_p5), %s590_s14, 128  }
 0x419   : > { %890 = vsyncadd (!%p725_p5), %s590_s14, 4294967168  ;;  %s19_s23 = sadd.s32 1, %s913_s23   ;;  %s1158_s18 = smov %s897_s19 }
 0x41a   : > { %p16_p6 = scmp.ge.s32.totalorder %s19_s23, 4   ;;  %s1159_s19 = smov %s901_s20 }
 0x41b   : > { %s1160_s20 = smov %s1006_s6  ;;  %s1161_s21 = smov %s909_s22 }
 0x41c   : > { %s1162_s22 = smov %s1164_s26  ;;  %18 = sbr.rel (!%p16_p6) target bundleno = 5 (0x5), region = 84 }
 0x423   :  { %595 = vsyncpa [#allocation7], 1 }
 0x424   :  { %597 = vsyncpa [#allocation7 + $0x1], 1 }
 0x425   :  { %598 = vsyncpa [#allocation8], 1 }
 0x426   :  { %600 = vsyncpa [#allocation8 + $0x1], 1 }

</bundles_post_ra>
